<compile_context>
chip_gen: v5e
topology: v5e:2x2
jax: 0.10.0
libtpu: 0.0.40
codegen_flags: <defaults>
</compile_context>

<pallas_src>
import functools

import jax
import jax.numpy as jnp
from jax import lax
from jax.experimental import pallas as pl
from jax.experimental.pallas import tpu as pltpu


def _dice_stats_kernel(x_ref, t_ref, o_ref, acc_ref, *, n_classes, strip,
                       n_strips, tile_cols, n_inner, total_px, ragged):
    i = pl.program_id(2)

    @pl.when(i == 0)
    def _():
        acc_ref[...] = jnp.zeros_like(acc_ref)

    cls = lax.broadcasted_iota(jnp.int32, (n_classes, 1), 0)
    if ragged:
        # Global pixel offset of this chunk (only needed for the tail mask).
        chunk_start = (pl.program_id(1) * n_inner + i) * tile_cols

    def strip_body(s, carry):
        inter_c, psum_c, cnt_c = carry
        off = pl.multiple_of(s * strip, strip)
        x = x_ref[0, :, pl.ds(off, strip)].astype(jnp.float32)   # (C, strip)
        t = t_ref[0, :, pl.ds(off, strip)].astype(jnp.int32)     # (1, strip)

        # Softmax over the class (sublane) axis == F.softmax(input, dim=1).
        m = jnp.max(x, axis=0, keepdims=True)                    # (1, strip)
        e = jnp.exp(x - m)                                       # (C, strip)
        s_sum = jnp.sum(e, axis=0, keepdims=True)                # (1, strip)
        inv = pl.reciprocal(s_sum, approx=True)                  # EUP slot
        inv = inv * (2.0 - s_sum * inv)                          # one Newton step
        p = e * inv                                              # (C, strip)

        match = (t == cls)                                       # one-hot as bool
        if ragged:
            lane = lax.broadcasted_iota(jnp.int32, (1, strip), 1)
            valid = (chunk_start + off + lane) < total_px        # (1, strip)
            match = jnp.logical_and(match, valid)
            p = jnp.where(valid, p, 0.0)

        inter_c = inter_c + jnp.sum(jnp.where(match, p, 0.0),
                                    axis=-1, keepdims=True)      # intersection
        psum_c = psum_c + jnp.sum(p, axis=-1, keepdims=True)     # sum(prob)
        cnt_c = cnt_c + jnp.sum(match.astype(jnp.float32),
                                axis=-1, keepdims=True)          # class count
        return inter_c, psum_c, cnt_c

    zero = jnp.zeros((n_classes, 1), jnp.float32)
    inter, psum, cnt = lax.fori_loop(0, n_strips, strip_body, (zero, zero, zero))

    # One small accumulator update per grid step (not per strip).
    acc_ref[:, 0:1] += inter
    acc_ref[:, 1:2] += psum
    acc_ref[:, 2:3] += cnt

    @pl.when(i == pl.num_programs(2) - 1)
    def _():
        o_ref[0, 0] = acc_ref[...]


def dice_loss(logits, target, *, smooth=0.0, eps=1e-7, n_classes=12,
              tile_cols=131072, strip_cols=8192):
    B, C, H, W = logits.shape
    assert C == n_classes
    P = H * W

    # Consume NCHW directly: classes -> sublanes, pixels -> lanes (no transpose).
    x = logits.reshape(B, C, P)
    label_dtype = jnp.int32 if n_classes > 127 else jnp.int8
    t = target.reshape(B, 1, P).astype(label_dtype)

    # Lane-dense pixel tiles (multiple of 128), capped by what the input needs,
    # and processed in `strip_cols`-wide slices inside the kernel.
    tile_cols = max(128, (int(tile_cols) // 128) * 128)
    tile_cols = min(tile_cols, pl.cdiv(P, 128) * 128)
    strip_cols = max(128, (int(strip_cols) // 128) * 128)
    if tile_cols > strip_cols:
        tile_cols = (tile_cols // strip_cols) * strip_cols
    else:
        strip_cols = tile_cols
    n_strips = tile_cols // strip_cols

    n_chunks = pl.cdiv(P, tile_cols)
    ragged = (P % tile_cols) != 0          # last chunk is masked in-kernel

    # Second "parallel" axis so both v7x TensorCores work even when B == 1.
    n_outer = 2 if (n_chunks >= 2 and n_chunks % 2 == 0) else 1
    n_inner = n_chunks // n_outer

    kernel = functools.partial(
        _dice_stats_kernel, n_classes=n_classes, strip=strip_cols,
        n_strips=n_strips, tile_cols=tile_cols, n_inner=n_inner,
        total_px=P, ragged=ragged)

    stats = pl.pallas_call(
        kernel,
        out_shape=jax.ShapeDtypeStruct((B, n_outer, n_classes, 3), jnp.float32),
        grid_spec=pltpu.PrefetchScalarGridSpec(
            num_scalar_prefetch=0,
            grid=(B, n_outer, n_inner),
            in_specs=[
                pl.BlockSpec((1, n_classes, tile_cols),
                             lambda b, o, i: (b, 0, o * n_inner + i)),
                pl.BlockSpec((1, 1, tile_cols),
                             lambda b, o, i: (b, 0, o * n_inner + i)),
            ],
            out_specs=pl.BlockSpec((1, 1, n_classes, 3),
                                   lambda b, o, i: (b, o, 0, 0)),
            scratch_shapes=[pltpu.VMEM((n_classes, 3), jnp.float32)],
        ),
        compiler_params=pltpu.CompilerParams(
            dimension_semantics=("parallel", "parallel", "arbitrary"),
            vmem_limit_bytes=40 * 1024 * 1024,
        ),
    )(x, t)

    # Glue: combine partial stats, then the n_classes-element dice score,
    # presence mask and mean (matches the PyTorch forward exactly).
    stats = jnp.sum(stats, axis=(0, 1))                # (C, 3)
    inter = stats[:, 0]
    psum = stats[:, 1]
    cnt = stats[:, 2]

    cardinality = psum + cnt                           # sum(p) + sum(one_hot)
    dice = (2.0 * inter + smooth) / jnp.maximum(cardinality + smooth, eps)
    loss = (1.0 - dice) * (cnt > 0).astype(jnp.float32)
    return jnp.mean(loss)


def _dice_loss_ref(logits, target, *, smooth=0.0, eps=1e-7, n_classes=12):
    """Pure-JAX reference mirroring the PyTorch forward."""
    B = logits.shape[0]
    p = jax.nn.softmax(logits, axis=1).reshape(B, n_classes, -1)
    t = jax.nn.one_hot(target.reshape(B, -1), n_classes, dtype=p.dtype)
    t = jnp.transpose(t, (0, 2, 1))
    inter = jnp.sum(p * t, axis=(0, 2))
    card = jnp.sum(p + t, axis=(0, 2))
    dice = (2.0 * inter + smooth) / jnp.maximum(card + smooth, eps)
    loss = (1.0 - dice) * (jnp.sum(t, axis=(0, 2)) > 0).astype(p.dtype)
    return jnp.mean(loss)


if __name__ == "__main__":
    key = jax.random.PRNGKey(0)
    k1, k2 = jax.random.split(key)
    B, C, H, W = 2, 12, 16, 16

    logits = jax.random.normal(k1, (B, C, H, W), dtype=jnp.float32)
    target = jax.random.randint(k2, (B, H, W), 0, C, dtype=jnp.int32)

    out = dice_loss(logits, target)
    out = jax.block_until_ready(out)

    ref = _dice_loss_ref(logits, target)
    assert jnp.allclose(out, ref, atol=1e-5, rtol=1e-5), (out, ref)

    print("KERNEL_OK")
</pallas_src>

<mosaic_0001>
module attributes {stable_mosaic.version = 11 : i64} {
  func.func @_dice_stats_kernel(%arg0: i32, %arg1: i32, %arg2: i32, %arg3: memref<1x12x256xf32, #tpu.memory_space<vmem>>, %arg4: memref<1x1x256xi8, #tpu.memory_space<vmem>>, %arg5: memref<1x1x12x3xf32, #tpu.memory_space<vmem>>, %arg6: memref<12x3xf32, #tpu.memory_space<vmem>>) attributes {dimension_semantics = [#tpu.dimension_semantics<parallel>, #tpu.dimension_semantics<parallel>, #tpu.dimension_semantics<arbitrary>], iteration_bounds = array<i64: 2, 1, 1>, scalar_prefetch = 0 : i64, scratch_operands = 1 : i64, tpu.core_type = #tpu.core_type<tc>, window_params = [{transform_indices = @transform_0, window_bounds = array<i64: 1, 12, 256>}, {transform_indices = @transform_1, window_bounds = array<i64: 1, 1, 256>}, {transform_indices = @transform_2, window_bounds = array<i64: 1, 1, 12, 3>}]} {
    %c0_i32 = arith.constant 0 : i32
    %0 = arith.cmpi eq, %arg2, %c0_i32 : i32
    %1 = arith.extui %0 : i1 to i32
    %c0_i32_0 = arith.constant 0 : i32
    %2 = arith.cmpi ne, %1, %c0_i32_0 : i32
    scf.if %2 {
      %cst_24 = arith.constant 0.000000e+00 : f32
      %56 = vector.broadcast %cst_24 : f32 to vector<12x3xf32>
      %c0_25 = arith.constant 0 : index
      %c0_26 = arith.constant 0 : index
      %57 = vector.load %arg6[%c0_25, %c0_26] : memref<12x3xf32, #tpu.memory_space<vmem>>, vector<12x3xf32>
      tpu.vector_store %arg6[%c0_25, %c0_26], %56 {strides = array<i32>} : memref<12x3xf32, #tpu.memory_space<vmem>>, vector<12x3xf32>,
    } else {
    }
    %3 = tpu.iota {dimensions = array<i32: 0>} : vector<12x1xi32>
    %cst = arith.constant 0.000000e+00 : f32
    %4 = vector.broadcast %cst : f32 to vector<12x1xf32>
    %c0_i32_1 = arith.constant 0 : i32
    %c256_i32 = arith.constant 256 : i32
    %5 = arith.muli %c0_i32_1, %c256_i32 : i32
    %6 = tpu.assume_multiple %5, 256 : i32
    %c0 = arith.constant 0 : index
    %c0_2 = arith.constant 0 : index
    %7 = arith.index_cast %6 : i32 to index
    %8 = vector.load %arg3[%c0, %c0_2, %7] : memref<1x12x256xf32, #tpu.memory_space<vmem>>, vector<1x12x256xf32>
    %9 = vector.shape_cast %8 : vector<1x12x256xf32> to vector<12x256xf32>
    %c0_3 = arith.constant 0 : index
    %c0_4 = arith.constant 0 : index
    %10 = arith.index_cast %6 : i32 to index
    %11 = vector.load %arg4[%c0_3, %c0_4, %10] : memref<1x1x256xi8, #tpu.memory_space<vmem>>, vector<1x1x256xi8>
    %12 = vector.shape_cast %11 : vector<1x1x256xi8> to vector<1x256xi8>
    %13 = arith.extsi %12 : vector<1x256xi8> to vector<1x256xi32>
    %cst_5 = arith.constant dense<0xFF800000> : vector<256xf32>
    %14 = vector.multi_reduction <maximumf>, %9, %cst_5 [0] : vector<12x256xf32> to vector<256xf32>
    %15 = vector.shape_cast %14 : vector<256xf32> to vector<1x256xf32>
    %16 = vector.broadcast %15 : vector<1x256xf32> to vector<12x256xf32>
    %17 = arith.subf %9, %16 : vector<12x256xf32>
    %18 = math.exp %17 : vector<12x256xf32>
    %cst_6 = arith.constant dense<0.000000e+00> : vector<256xf32>
    %19 = vector.multi_reduction <add>, %18, %cst_6 [0] : vector<12x256xf32> to vector<256xf32>
    %20 = vector.shape_cast %19 : vector<256xf32> to vector<1x256xf32>
    %21 = tpu.reciprocal %20 {approx = true} : vector<1x256xf32> -> vector<1x256xf32>
    %22 = arith.mulf %20, %21 : vector<1x256xf32>
    %cst_7 = arith.constant 2.000000e+00 : f32
    %23 = vector.broadcast %cst_7 : f32 to vector<1x256xf32>
    %24 = arith.subf %23, %22 : vector<1x256xf32>
    %25 = arith.mulf %21, %24 : vector<1x256xf32>
    %26 = vector.broadcast %25 : vector<1x256xf32> to vector<12x256xf32>
    %27 = arith.mulf %18, %26 : vector<12x256xf32>
    %28 = vector.broadcast %13 : vector<1x256xi32> to vector<12x256xi32>
    %29 = vector.broadcast %3 : vector<12x1xi32> to vector<12x256xi32>
    %30 = arith.cmpi eq, %28, %29 : vector<12x256xi32>
    %cst_8 = arith.constant 0.000000e+00 : f32
    %31 = vector.broadcast %cst_8 : f32 to vector<12x256xf32>
    %32 = arith.select %30, %27, %31 : vector<12x256xi1>, vector<12x256xf32>
    %cst_9 = arith.constant dense<0.000000e+00> : vector<12xf32>
    %33 = vector.multi_reduction <add>, %32, %cst_9 [1] : vector<12x256xf32> to vector<12xf32>
    %34 = vector.shape_cast %33 : vector<12xf32> to vector<12x1xf32>
    %35 = arith.addf %4, %34 : vector<12x1xf32>
    %cst_10 = arith.constant dense<0.000000e+00> : vector<12xf32>
    %36 = vector.multi_reduction <add>, %27, %cst_10 [1] : vector<12x256xf32> to vector<12xf32>
    %37 = vector.shape_cast %36 : vector<12xf32> to vector<12x1xf32>
    %38 = arith.addf %4, %37 : vector<12x1xf32>
    %39 = arith.extui %30 : vector<12x256xi1> to vector<12x256xi32>
    %40 = arith.sitofp %39 : vector<12x256xi32> to vector<12x256xf32>
    %cst_11 = arith.constant dense<0.000000e+00> : vector<12xf32>
    %41 = vector.multi_reduction <add>, %40, %cst_11 [1] : vector<12x256xf32> to vector<12xf32>
    %42 = vector.shape_cast %41 : vector<12xf32> to vector<12x1xf32>
    %43 = arith.addf %4, %42 : vector<12x1xf32>
    %c1_i32 = arith.constant 1 : i32
    %c0_12 = arith.constant 0 : index
    %c0_13 = arith.constant 0 : index
    %44 = vector.load %arg6[%c0_12, %c0_13] : memref<12x3xf32, #tpu.memory_space<vmem>>, vector<12x1xf32>
    %45 = arith.addf %44, %35 : vector<12x1xf32>
    %c0_14 = arith.constant 0 : index
    %c0_15 = arith.constant 0 : index
    %46 = vector.load %arg6[%c0_14, %c0_15] : memref<12x3xf32, #tpu.memory_space<vmem>>, vector<12x1xf32>
    tpu.vector_store %arg6[%c0_14, %c0_15], %45 {strides = array<i32>} : memref<12x3xf32, #tpu.memory_space<vmem>>, vector<12x1xf32>,
    %c0_16 = arith.constant 0 : index
    %c1 = arith.constant 1 : index
    %47 = vector.load %arg6[%c0_16, %c1] : memref<12x3xf32, #tpu.memory_space<vmem>>, vector<12x1xf32>
    %48 = arith.addf %47, %38 : vector<12x1xf32>
    %c0_17 = arith.constant 0 : index
    %c1_18 = arith.constant 1 : index
    %49 = vector.load %arg6[%c0_17, %c1_18] : memref<12x3xf32, #tpu.memory_space<vmem>>, vector<12x1xf32>
    tpu.vector_store %arg6[%c0_17, %c1_18], %48 {strides = array<i32>} : memref<12x3xf32, #tpu.memory_space<vmem>>, vector<12x1xf32>,
    %c0_19 = arith.constant 0 : index
    %c2 = arith.constant 2 : index
    %50 = vector.load %arg6[%c0_19, %c2] : memref<12x3xf32, #tpu.memory_space<vmem>>, vector<12x1xf32>
    %51 = arith.addf %50, %43 : vector<12x1xf32>
    %c0_20 = arith.constant 0 : index
    %c2_21 = arith.constant 2 : index
    %52 = vector.load %arg6[%c0_20, %c2_21] : memref<12x3xf32, #tpu.memory_space<vmem>>, vector<12x1xf32>
    tpu.vector_store %arg6[%c0_20, %c2_21], %51 {strides = array<i32>} : memref<12x3xf32, #tpu.memory_space<vmem>>, vector<12x1xf32>,
    %c0_i32_22 = arith.constant 0 : i32
    %53 = arith.cmpi eq, %arg2, %c0_i32_22 : i32
    %54 = arith.extui %53 : i1 to i32
    %c0_i32_23 = arith.constant 0 : i32
    %55 = arith.cmpi ne, %54, %c0_i32_23 : i32
    scf.if %55 {
      %c0_24 = arith.constant 0 : index
      %c0_25 = arith.constant 0 : index
      %56 = vector.load %arg6[%c0_24, %c0_25] : memref<12x3xf32, #tpu.memory_space<vmem>>, vector<12x3xf32>
      %c0_26 = arith.constant 0 : index
      %c0_27 = arith.constant 0 : index
      %c0_28 = arith.constant 0 : index
      %c0_29 = arith.constant 0 : index
      %57 = vector.load %arg5[%c0_26, %c0_27, %c0_28, %c0_29] : memref<1x1x12x3xf32, #tpu.memory_space<vmem>>, vector<1x1x12x3xf32>
      %58 = vector.shape_cast %57 : vector<1x1x12x3xf32> to vector<12x3xf32>
      %59 = vector.shape_cast %56 : vector<12x3xf32> to vector<1x1x12x3xf32>
      tpu.vector_store %arg5[%c0_26, %c0_27, %c0_28, %c0_29], %59 {strides = array<i32>} : memref<1x1x12x3xf32, #tpu.memory_space<vmem>>, vector<1x1x12x3xf32>,
    } else {
    }
    return
  }
  func.func @transform_0(%arg0: i32, %arg1: i32, %arg2: i32) -> (i32, i32, i32) {
    %c1_i32 = arith.constant 1 : i32
    %0 = arith.muli %arg1, %c1_i32 : i32
    %1 = arith.addi %0, %arg2 : i32
    %c0_i32 = arith.constant 0 : i32
    %c0_i32_0 = arith.constant 0 : i32
    return %arg0, %c0_i32, %1 : i32, i32, i32
  }
  func.func @transform_1(%arg0: i32, %arg1: i32, %arg2: i32) -> (i32, i32, i32) {
    %c1_i32 = arith.constant 1 : i32
    %0 = arith.muli %arg1, %c1_i32 : i32
    %1 = arith.addi %0, %arg2 : i32
    %c0_i32 = arith.constant 0 : i32
    %c0_i32_0 = arith.constant 0 : i32
    return %arg0, %c0_i32, %1 : i32, i32, i32
  }
  func.func @transform_2(%arg0: i32, %arg1: i32, %arg2: i32) -> (i32, i32, i32, i32) {
    %c0_i32 = arith.constant 0 : i32
    %c0_i32_0 = arith.constant 0 : i32
    %c0_i32_1 = arith.constant 0 : i32
    return %arg0, %arg1, %c0_i32, %c0_i32_0 : i32, i32, i32, i32
  }
}

</mosaic_0001>

<bundles_post_ra>
// kernel: tpu_custom_call.1
= control target key start
LH: loop header
LB: loop body
LE: loop exit
PB: predicated region body
PF: predicated region fallthrough
CT: control target
= control target key end

     0   :  { %s595_s9 = smov 0   ;;  %s597_s10 = smov 0   ;;  %s682_s0 = inlined_call_operand.vmem [shape: f32[2,12,256], index: 0, kind: input, shape index: {}]   ;;  %s683_s1 = inlined_call_operand.vmem [shape: s8[2,1,256], index: 1, kind: input, shape index: {}]   ;;  %s684_s2 = inlined_call_operand.vmem [shape: f32[2,1,12,3], index: 2, kind: output, shape index: {}]  }
   0x1   :  { %s599_s11 = smov 0  }
   0x2 LB: > { %s31_s12 = sadd.s32 1, %s573_s10  ;;  %p504_p0 = scmp.ge.s32.totalorder %s577_s11, 1  ;;  %s577_s11 = sphi %s599_s11, %s12_s11   ;;  %s573_s10 = sphi %s597_s10, %s694_s10   ;;  %s569_s9 = sphi %s595_s9, %s693_s9  }
   0x3   : > { %p33_p1 = scmp.ge.s32.totalorder %s31_s12, 2  ;;  %p164_p2 = scmp.lt.s32.totalorder %s577_s11, 3 }
   0x5   : > { %s696_s12 = smov (%p33_p1, %s31_s12), 0  ;;  %p165_p3 = pnand %p504_p0, %p164_p2 }
   0x6   : > { %p206_p4 = scmp.lt.s32.totalorder (!%p165_p3), %s569_s9, 1 }
   0x7   : > { %168 = sbr.rel (%p165_p3) target bundleno = 234 (0xea), region = 28 }
   0xc   : > { %s698_s9 = smov (!%p206_p4, %s569_s9), 1  ;;  %vm253_vm0 = vcmask 1043456   ;;  %v244_v34 = vlaneseq  ;;  %vm240_vm4 = vcmask 23552   ;;  %v579_v58 = vmov 0.0  }
   0xd   : > { %s516_s13 = sshll.u32 %s698_s9, 5  ;;  %s507_s17 = sshll.u32 %s698_s9, 1  ;;  %241 = vst.msk [vmem:[#allocation2] sm:$0xff] %vm240_vm4, %v579_v58  ;;  %vm242_vm6 = vcmask 19456   ;;  %vm364_vm7 = vcmask 7168   ;;  %vm366_vm8 = vcmask 3072  }
   0xe   : > { %s213_s16 = scalar_lea.vmem %s682_s0, %s516_s13  ;;  %s224_s20 = scalar_lea.vmem %s683_s1, %s507_s17  ;;  %v245_v42 = vshrl.u32 %v244_v34, 7  ;;  %243 = vst.msk [vmem:[#allocation2 + $0x8] sm:$0xf] %vm242_vm6, %v579_v58  ;;  %vm372_vm9 = vcmask 15368   ;;  %vm374_vm10 = vcmask 11272   ;;  %vm380_vm11 = vcmask 23568  }
   0xf   : > { %v247_v0 = vld [vmem:[%s213_s16] sm:$0xff]  ;;  %v248_v1 = vld [vmem:[%s213_s16 + $0x8] sm:$0xff]  ;;  %v249_v2 = vld [vmem:[%s213_s16 + $0x10] sm:$0xf]  ;;  %s517_s21 = sshll.u32 %s698_s9, 4  ;;  %vm382_vm12 = vcmask 19472  }
  0x10   : > { %v250_v3 = vld [vmem:[%s213_s16 + $0x18] sm:$0xf]  ;;  %v254_v4 = vsel %vm253_vm0, %v249_v2, -inf  ;;  %v251_v28 = vld [vmem:[%s224_s20] sm:$0x3]  ;;  %v246_v48 = vadd.s32 8, %v245_v42  ;;  %s235_s24 = scalar_lea.vmem %s684_s2, %s517_s21 }
  0x11   : > { %v255_v5 = vmax.f32 %v247_v0, %v254_v4  ;;  %v262_v6 = vsel %vm253_vm0, %v250_v3, -inf  ;;  %v252_v30 = vunpack.c.0.s8 %v251_v28 }
  0x12   : > { %v263_v7 = vmax.f32 %v248_v1, %v262_v6 }
  0x13   : > { %v256_v8 = vrot.slane %v255_v5, 4  ;;  %v310_v38 = vperm.slane %v252_v30, 0  ;;  %v311_v39 = vperm.slane %v252_v30, 4 }
  0x14   : > { %v264_v9 = vrot.slane %v263_v7, 4  ;;  %v360_v30 = vld [vmem:[#allocation2] sm:$0xff] }
  0x15   : > { %v257_v10 = vmax.f32 %v255_v5, %v256_v8  ;;  %v312_v45 = vperm.slane %v310_v38, 0  ;;  %v313_v46 = vperm.slane %v311_v39, 0 }
  0x16   : > { %v265_v11 = vmax.f32 %v263_v7, %v264_v9 }
  0x17   : > { %v258_v12 = vrot.slane %v257_v10, 2  ;;  %vm627_vm1 = vcmp.eq.s32.totalorder %v312_v45, %v245_v42  ;;  %vm631_vm2 = vcmp.eq.s32.totalorder %v313_v46, %v245_v42  ;;  %vm635_vm3 = vcmp.eq.s32.totalorder %v312_v45, %v246_v48 }
  0x18   : > { %v266_v13 = vrot.slane %v265_v11, 2  ;;  %vm639_vm5 = vcmp.eq.s32.totalorder %v313_v46, %v246_v48  ;;  %v510_v59 = vsel %vm627_vm1, 1.0, %v579_v58  ;;  %v511_v60 = vsel %vm631_vm2, 1.0, %v579_v58 }
  0x19   : > { %v259_v14 = vmax.f32 %v257_v10, %v258_v12  ;;  %v350_v62 = vadd.f32 %v511_v60, %v510_v59  ;;  %v512_v63 = vsel %vm635_vm3, 1.0, %v579_v58 }
  0x1a   : > { %v267_v15 = vmax.f32 %v265_v11, %v266_v13 }
  0x1b   : > { %v260_v16 = vrot.slane %v259_v14, 1  ;;  %351 = vadd.xlane.f32.xlu2 %v350_v62 }
  0x1c   : > { %v268_v17 = vrot.slane %v267_v15, 1 }
  0x1d   : > { %v261_v18 = vmax.f32 %v259_v14, %v260_v16 }
  0x1e   : > { %v269_v19 = vmax.f32 %v267_v15, %v268_v17 }
  0x1f   : > { %v270_v20 = vsub.f32 %v247_v0, %v261_v18  ;;  %v272_v21 = vsub.f32 %v249_v2, %v261_v18  ;;  %v513_v0 = vsel %vm639_vm5, 1.0, %v579_v58 }
  0x20   : > { %v271_v22 = vsub.f32 %v248_v1, %v269_v19  ;;  %v273_v23 = vsub.f32 %v250_v3, %v269_v19  ;;  %v353_v3 = vsel %vm253_vm0, %v512_v63, 0.0  ;;  %v354_v4 = vsel %vm253_vm0, %v513_v0, 0.0 }
  0x21   : > { %v274_v24 = vmul.f32 1.442695, %v270_v20  ;;  %v278_v25 = vmul.f32 1.442695, %v272_v21  ;;  %v355_v5 = vadd.f32 %v354_v4, %v353_v3 }
  0x22   : > { %v276_v26 = vmul.f32 1.442695, %v271_v22  ;;  %v280_v27 = vmul.f32 1.442695, %v273_v23 }
  0x23   : > { %543 = vpow2.f32 %v274_v24  ;;  %356 = vadd.xlane.f32.xlu2 %v355_v5 }
  0x24   : > { %545 = vpow2.f32 %v276_v26 }
  0x25   : > { %547 = vpow2.f32 %v278_v25 }
  0x26   : > { %549 = vpow2.f32 %v280_v27 }
  0x29   : > { %v544_v29 = vpop.eup %543 }
  0x2a   : > { %v546_v31 = vpop.eup %545 }
  0x2b   : > { %v548_v32 = vpop.eup %547 }
  0x2c   : > { %v550_v33 = vpop.eup %549  ;;  %v282_v35 = vsel %vm253_vm0, %v548_v32, 0.0 }
  0x2d   : > { %v283_v36 = vadd.f32 %v544_v29, %v282_v35  ;;  %v290_v37 = vsel %vm253_vm0, %v550_v33, 0.0 }
  0x2e   : > { %v291_v40 = vadd.f32 %v546_v31, %v290_v37 }
  0x2f   : > { %v284_v41 = vrot.slane %v283_v36, 4 }
  0x30   : > { %v292_v43 = vrot.slane %v291_v40, 4 }
  0x31   : > { %v285_v44 = vadd.f32 %v284_v41, %v283_v36 }
  0x32   : > { %v293_v47 = vadd.f32 %v292_v43, %v291_v40 }
  0x33   : > { %v286_v49 = vrot.slane %v285_v44, 2 }
  0x34   : > { %v294_v50 = vrot.slane %v293_v47, 2 }
  0x35   : > { %v287_v51 = vadd.f32 %v286_v49, %v285_v44 }
  0x36   : > { %v295_v54 = vadd.f32 %v294_v50, %v293_v47 }
  0x37   : > { %v288_v56 = vrot.slane %v287_v51, 1 }
  0x38   : > { %v296_v61 = vrot.slane %v295_v54, 1 }
  0x39   : > { %v289_v1 = vadd.f32 %v288_v56, %v287_v51 }
  0x3a   : > { %v297_v2 = vadd.f32 %v296_v61, %v295_v54 }
  0x3b   : > { %551 = vrcp.f32 %v289_v1 }
  0x3c   : > { %553 = vrcp.f32 %v297_v2 }
  0x41   : > { %v552_v6 = vpop.eup %551 }
  0x42   : > { %v554_v7 = vpop.eup %553  ;;  %v300_v8 = vmul.f32 %v552_v6, %v289_v1 }
  0x43   : > { %v301_v9 = vmul.f32 %v554_v7, %v297_v2 }
  0x44   : > { %v302_v10 = vsub.f32 2.0, %v300_v8 }
  0x45   : > { %v303_v11 = vsub.f32 2.0, %v301_v9 }
  0x46   : > { %v304_v12 = vmul.f32 %v552_v6, %v302_v10 }
  0x47   : > { %v305_v13 = vmul.f32 %v554_v7, %v303_v11 }
  0x48   : > { %v306_v14 = vmul.f32 %v544_v29, %v304_v12  ;;  %v308_v15 = vmul.f32 %v548_v32, %v304_v12 }
  0x49   : > { %v307_v16 = vmul.f32 %v546_v31, %v305_v13  ;;  %v309_v17 = vmul.f32 %v550_v33, %v305_v13  ;;  %v361_v33 = vld [vmem:[#allocation2 + $0x8] sm:$0xf] }
  0x4a   : > { %v318_v18 = vsel %vm627_vm1, %v306_v14, 0.0  ;;  %v320_v22 = vsel %vm635_vm3, %v308_v15, 0.0  ;;  %v335_v24 = vsel %vm253_vm0, %v308_v15, 0.0 }
  0x4b   : > { %v319_v19 = vsel %vm631_vm2, %v307_v16, 0.0  ;;  %v332_v20 = vadd.f32 %v307_v16, %v306_v14  ;;  %v321_v23 = vsel %vm639_vm5, %v309_v17, 0.0  ;;  %v336_v25 = vsel %vm253_vm0, %v309_v17, 0.0 }
  0x4c   : > { %v322_v21 = vadd.f32 %v319_v19, %v318_v18  ;;  %v325_v26 = vsel %vm253_vm0, %v320_v22, 0.0  ;;  %v326_v27 = vsel %vm253_vm0, %v321_v23, 0.0  ;;  %v337_v28 = vadd.f32 %v336_v25, %v335_v24 }
  0x4d   : > { %333 = vadd.xlane.f32.xlu1 %v332_v20  ;;  %v327_v29 = vadd.f32 %v326_v27, %v325_v26 }
  0x4e   : > { %323 = vadd.xlane.f32.xlu0 %v322_v21 }
  0x55   : > { %338 = vadd.xlane.f32.xlu1 %v337_v28 }
  0x56   : > { %328 = vadd.xlane.f32.xlu0 %v327_v29 }
  0x8e   : > { %v352_v40 = vpop.xlane.xlu2 %351 }
  0x96   : > { %v357_v45 = vpop.xlane.xlu2 %356 }
  0xc0   : > { %v334_v34 = vpop.xlane.xlu1 %333 }
  0xc1   : > { %v324_v31 = vpop.xlane.xlu0 %323 }
  0xc2   : > { %v362_v32 = vadd.f32 %v360_v30, %v324_v31 }
  0xc4   : > { %365 = vst.msk [vmem:[#allocation2] sm:$0xff] %vm364_vm7, %v362_v32 }
  0xc8   : > { %v339_v39 = vpop.xlane.xlu1 %338 }
  0xc9   : > { %v329_v35 = vpop.xlane.xlu0 %328 }
  0xca   : > { %v363_v36 = vadd.f32 %v361_v33, %v329_v35 }
  0xcb   : > { %v368_v37 = vld [vmem:[#allocation2] sm:$0xff] }
  0xcc   : > { %367 = vst.msk [vmem:[#allocation2 + $0x8] sm:$0xf] %vm366_vm8, %v363_v36  ;;  %v370_v38 = vadd.f32 %v368_v37, %v334_v34 }
  0xce   : > { %373 = vst.msk [vmem:[#allocation2] sm:$0xff] %vm372_vm9, %v370_v38 }
  0xd3   : > { %v369_v41 = vld [vmem:[#allocation2 + $0x8] sm:$0xf] }
  0xd4   : > { %v371_v42 = vadd.f32 %v369_v41, %v339_v39 }
  0xd5   : > { %v376_v43 = vld [vmem:[#allocation2] sm:$0xff] }
  0xd6   : > { %375 = vst.msk [vmem:[#allocation2 + $0x8] sm:$0xf] %vm374_vm10, %v371_v42  ;;  %v378_v44 = vadd.f32 %v376_v43, %v352_v40 }
  0xd8   : > { %381 = vst.msk [vmem:[#allocation2] sm:$0xff] %vm380_vm11, %v378_v44 }
  0xdd   : > { %v377_v46 = vld [vmem:[#allocation2 + $0x8] sm:$0xf] }
  0xde   : > { %v379_v47 = vadd.f32 %v377_v46, %v357_v45 }
  0xdf   : > { %v387_v48 = vld [vmem:[#allocation2] sm:$0xff] }
  0xe0   : > { %390 = vst.msk [vmem:[%s235_s24] sm:$0xff] %vm240_vm4, %v387_v48 }
  0xe1   : > { %383 = vst.msk [vmem:[#allocation2 + $0x8] sm:$0xf] %vm382_vm12, %v379_v47 }
  0xe8   : > { %v388_v49 = vld [vmem:[#allocation2 + $0x8] sm:$0xf] }
  0xe9   : > { %392 = vst.msk [vmem:[%s235_s24 + $0x8] sm:$0xf] %vm242_vm6, %v388_v49 }
  0xea PF: > { %s12_s11 = sadd.s32 1, %s577_s11   ;;  %s693_s9 = smov %s573_s10 }
  0xeb   : > { %p9_p5 = scmp.ge.s32.totalorder %s12_s11, 4   ;;  %s694_s10 = smov %s696_s12 }
  0xed   :  { %11 = sbr.rel (!%p9_p5) target bundleno = 2 (0x2), region = 69 }

</bundles_post_ra>
